<compile_context>
chip_gen: v7x
topology: tpu7x:2x2x1
jax: 0.10.0
libtpu: 0.0.40
codegen_flags: <defaults>
</compile_context>

<pallas_src>
import jax
import jax.numpy as jnp
from jax.experimental import pallas as pl
from jax.experimental.pallas import tpu as pltpu

D = 32            # synthetic stand-in for BERT hidden size (768 in reference)
MAX_SEQ = 16      # synthetic stand-in for max_seq_length=128
MAX_CAND = 8      # static padded candidate count (multiple of 8 sublanes)
VOCAB = 100
CLS_ID, SEP_ID, PAD_ID = 1, 2, 0


# ----------------------------- Pallas kernel -------------------------------

def _biencoder_kernel(pmat_ref, ce_ref, dw_ref, de_ref,
                      wc_ref, bc_ref, wd_ref, bd_ref, out_ref):
    """Fused per-example: masked mean-pool -> pooler(tanh) -> dot -> sigmoid."""
    # Candidate branch.  pmat is the per-example block-diagonal mean-pool
    # matrix (MAX_CAND, MAX_CAND*L); ce is the flattened token embeddings
    # (MAX_CAND*L, D).  A single MXU matmul performs the masked mean pool.
    pooled_c = jnp.dot(pmat_ref[...], ce_ref[...],
                       preferred_element_type=jnp.float32)             # (NC, D)
    feat = jnp.tanh(
        jnp.dot(pooled_c, wc_ref[...], preferred_element_type=jnp.float32)
        + bc_ref[...])                                                  # (NC, D)

    # Description branch (frozen encoder): VPU multiply + sublane reduce pool.
    pooled_d = jnp.sum(de_ref[...] * dw_ref[...], axis=0, keepdims=True)  # (1, D)
    des = jnp.tanh(
        jnp.dot(pooled_d, wd_ref[...], preferred_element_type=jnp.float32)
        + bd_ref[...])                                                  # (1, D)

    # Score: sigmoid(feat . des) — elementwise multiply (VPU) + lane reduce
    # (XLU) instead of an M=1 MXU matmul.
    s = jnp.sum(feat * des, axis=-1, keepdims=True)                     # (NC, 1)
    out_ref[...] = jax.nn.sigmoid(s)


@jax.jit
def _batched_scores(cand_ids, cand_mask, des_ids, des_mask,
                    model_params, des_params):
    """Whole batch -> (B, MAX_CAND) scores via one pallas_call (grid over B)."""
    B, NC, L = cand_ids.shape
    d = model_params["emb"].shape[1]

    # TODO(synk): full pretrained BertModel body (12 transformer layers +
    # WordPiece tokenizer) replaced by an embedding lookup (XLA gather) feeding
    # the fused Pallas kernel.
    ce_flat = model_params["emb"][cand_ids].reshape(B * NC * L, d)      # (B*NC*L, D)
    de_flat = des_params["emb"][des_ids].reshape(B * L, d)              # (B*L, D)

    # Per-token mean-pool weights = mask / count.  Candidates get a per-example
    # block-diagonal pooling matrix so the pool is one in-kernel MXU matmul.
    c_cnt = jnp.maximum(cand_mask.sum(-1, keepdims=True), 1.0)          # (B, NC, 1)
    c_w = (cand_mask / c_cnt).astype(jnp.float32)                       # (B, NC, L)
    eye = jnp.eye(NC, dtype=jnp.float32)
    pmat = (eye[None, :, :, None] * c_w[:, :, None, :]).reshape(B * NC, NC * L)

    d_cnt = jnp.maximum(des_mask.sum(-1, keepdims=True), 1.0)           # (B, 1)
    d_w = (des_mask / d_cnt).astype(jnp.float32).reshape(B * L, 1)      # (B*L, 1)

    scores_col = pl.pallas_call(
        _biencoder_kernel,
        out_shape=jax.ShapeDtypeStruct((B * NC, 1), jnp.float32),
        grid=(B,),
        in_specs=[
            pl.BlockSpec((NC, NC * L), lambda b: (b, 0)),   # pooling matrix
            pl.BlockSpec((NC * L, d), lambda b: (b, 0)),    # cand embeddings
            pl.BlockSpec((L, 1), lambda b: (b, 0)),         # des pool weights
            pl.BlockSpec((L, d), lambda b: (b, 0)),         # des embeddings
            pl.BlockSpec((d, d), lambda b: (0, 0)),         # w_pool (trainable)
            pl.BlockSpec((1, d), lambda b: (0, 0)),         # b_pool (trainable)
            pl.BlockSpec((d, d), lambda b: (0, 0)),         # w_pool (frozen)
            pl.BlockSpec((1, d), lambda b: (0, 0)),         # b_pool (frozen)
        ],
        out_specs=pl.BlockSpec((NC, 1), lambda b: (b, 0)),
        compiler_params=pltpu.CompilerParams(
            dimension_semantics=("parallel",)),
    )(pmat, ce_flat, d_w, de_flat,
      model_params["w_pool"], model_params["b_pool"],
      des_params["w_pool"], des_params["b_pool"])
    return scores_col.reshape(B, NC)


# ----------------------- tokenization / forward glue ------------------------

def _tokenize(seq):
    s = list(seq)[: MAX_SEQ - 2]
    toks = [CLS_ID] + s + [SEP_ID]
    mask = [1] * len(toks)
    pad = [PAD_ID] * (MAX_SEQ - len(toks))
    return toks + pad, mask + pad


def forward(batch, model_params, des_params):
    B = len(batch)
    ncs = [len(ex["input_tokens"]) for ex in batch]
    nc = ncs[0]
    # torch.stack in the reference forward() already requires a uniform
    # candidate count across the batch.
    assert all(n == nc for n in ncs) and nc <= MAX_CAND

    cand_ids, cand_mask, des_ids, des_mask = [], [], [], []
    for ex in batch:
        ids_b, mask_b = [], []
        for s in ex["input_tokens"]:
            t, m = _tokenize(s)
            ids_b.append(t)
            mask_b.append(m)
        while len(ids_b) < MAX_CAND:                 # static candidate padding
            ids_b.append([PAD_ID] * MAX_SEQ)
            mask_b.append([0] * MAX_SEQ)
        cand_ids.append(ids_b)
        cand_mask.append(mask_b)
        t, m = _tokenize(ex["description_token"])
        des_ids.append(t)
        des_mask.append(m)

    cand_ids = jnp.asarray(cand_ids, jnp.int32)       # (B, MAX_CAND, L)
    cand_mask = jnp.asarray(cand_mask, jnp.float32)   # (B, MAX_CAND, L)
    des_ids = jnp.asarray(des_ids, jnp.int32)         # (B, L)
    des_mask = jnp.asarray(des_mask, jnp.float32)     # (B, L)

    scores = _batched_scores(cand_ids, cand_mask, des_ids, des_mask,
                             model_params, des_params)   # (B, MAX_CAND)

    # Reference forward(): per-example score is (1, num_candidates); pad with
    # zero ROWS up to max_n, stack, then view(-1).
    feature, label, mask = [], [], []
    max_n = max(len(bd["labels"]) for bd in batch)
    for bi, ex in enumerate(batch):
        f = scores[bi:bi + 1, :nc]                        # (1, nc) == get_feature(ex)
        num, fdim = f.shape                               # num == 1
        f = jnp.concatenate(
            [f, jnp.zeros((max_n - num, fdim), jnp.float32)], axis=0)
        l = list(ex["labels"]) + [-10] * (max_n - len(ex["label"]))
        m = [1] * len(ex["labels"]) + [0] * (max_n - len(ex["label"]))
        feature.append(f)
        label.append(l)
        mask.append(m)
    feature = jnp.stack(feature, axis=0).reshape(-1)      # feature.view(-1)
    label = jnp.asarray(label, jnp.float32)
    mask = jnp.asarray(mask, jnp.float32)
    return feature, label, mask


def init_params(key):
    k1, k2, k3 = jax.random.split(key, 3)
    return {
        "emb": jax.random.normal(k1, (VOCAB, D), jnp.float32) * 0.02,
        "w_pool": jax.random.normal(k2, (D, D), jnp.float32) * 0.02,
        "b_pool": jax.random.normal(k3, (1, D), jnp.float32) * 0.02,
    }


if __name__ == "__main__":
    key = jax.random.PRNGKey(0)
    km, kd, kt = jax.random.split(key, 3)
    model_params = init_params(km)      # trainable encoder stand-in
    des_params = init_params(kd)        # frozen description encoder stand-in

    def rand_tokens(k, n):
        return [int(t) for t in jax.random.randint(k, (n,), 3, VOCAB)]

    keys = jax.random.split(kt, 8)
    batch = []
    for b in range(2):
        ex = {
            "input_tokens": [rand_tokens(keys[b * 4 + i], 6 + i) for i in range(3)],
            "description_token": rand_tokens(keys[b * 4 + 3], 7),
            "labels": [1, 0, 1],
            "label": [1, 0, 1],
        }
        batch.append(ex)

    feature, label, mask_arr = forward(batch, model_params, des_params)
    jax.block_until_ready((feature, label, mask_arr))
    assert feature.shape == (2 * 3 * 3,)
    assert label.shape == (2, 3) and mask_arr.shape == (2, 3)
    assert bool(jnp.all((feature >= 0.0) & (feature <= 1.0)))   # sigmoid range / zero pad
    print("KERNEL_OK")
</pallas_src>

<mosaic_0001>
module attributes {stable_mosaic.version = 11 : i64} {
  func.func @_biencoder_kernel(%arg0: i32, %arg1: memref<8x128xf32, #tpu.memory_space<vmem>>, %arg2: memref<128x32xf32, #tpu.memory_space<vmem>>, %arg3: memref<16x1xf32, #tpu.memory_space<vmem>>, %arg4: memref<16x32xf32, #tpu.memory_space<vmem>>, %arg5: memref<32x32xf32, #tpu.memory_space<vmem>>, %arg6: memref<1x32xf32, #tpu.memory_space<vmem>>, %arg7: memref<32x32xf32, #tpu.memory_space<vmem>>, %arg8: memref<1x32xf32, #tpu.memory_space<vmem>>, %arg9: memref<8x1xf32, #tpu.memory_space<vmem>>) attributes {dimension_semantics = [#tpu.dimension_semantics<parallel>], iteration_bounds = array<i64: 2>, scalar_prefetch = 0 : i64, scratch_operands = 0 : i64, tpu.core_type = #tpu.core_type<tc>, window_params = [{transform_indices = @transform_0, window_bounds = array<i64: 8, 128>}, {transform_indices = @transform_1, window_bounds = array<i64: 128, 32>}, {transform_indices = @transform_2, window_bounds = array<i64: 16, 1>}, {transform_indices = @transform_3, window_bounds = array<i64: 16, 32>}, {pipeline_mode = #tpu.pipeline_mode<synchronous>, transform_indices = @transform_4, window_bounds = array<i64: 32, 32>}, {pipeline_mode = #tpu.pipeline_mode<synchronous>, transform_indices = @transform_5, window_bounds = array<i64: 1, 32>}, {pipeline_mode = #tpu.pipeline_mode<synchronous>, transform_indices = @transform_6, window_bounds = array<i64: 32, 32>}, {pipeline_mode = #tpu.pipeline_mode<synchronous>, transform_indices = @transform_7, window_bounds = array<i64: 1, 32>}, {transform_indices = @transform_8, window_bounds = array<i64: 8, 1>}]} {
    %c0 = arith.constant 0 : index
    %c0_0 = arith.constant 0 : index
    %0 = vector.load %arg1[%c0, %c0_0] : memref<8x128xf32, #tpu.memory_space<vmem>>, vector<8x128xf32>
    %c0_1 = arith.constant 0 : index
    %c0_2 = arith.constant 0 : index
    %1 = vector.load %arg2[%c0_1, %c0_2] : memref<128x32xf32, #tpu.memory_space<vmem>>, vector<128x32xf32>
    %cst = arith.constant dense<0.000000e+00> : vector<8x32xf32>
    %2 = tpu.matmul %0, %1, %cst {dimension_numbers = #tpu.dot_dimension_numbers<[1], [0], [0], [1], [0, 0, 1, 1], [], []>} : vector<8x128xf32>, vector<128x32xf32>, vector<8x32xf32> -> vector<8x32xf32>
    %c0_3 = arith.constant 0 : index
    %c0_4 = arith.constant 0 : index
    %3 = vector.load %arg5[%c0_3, %c0_4] : memref<32x32xf32, #tpu.memory_space<vmem>>, vector<32x32xf32>
    %cst_5 = arith.constant dense<0.000000e+00> : vector<8x32xf32>
    %4 = tpu.matmul %2, %3, %cst_5 {dimension_numbers = #tpu.dot_dimension_numbers<[1], [0], [0], [1], [0, 0, 1, 1], [], []>} : vector<8x32xf32>, vector<32x32xf32>, vector<8x32xf32> -> vector<8x32xf32>
    %c0_6 = arith.constant 0 : index
    %c0_7 = arith.constant 0 : index
    %5 = vector.load %arg6[%c0_6, %c0_7] : memref<1x32xf32, #tpu.memory_space<vmem>>, vector<1x32xf32>
    %6 = vector.broadcast %5 : vector<1x32xf32> to vector<8x32xf32>
    %7 = arith.addf %4, %6 : vector<8x32xf32>
    %8 = math.tanh %7 : vector<8x32xf32>
    %c0_8 = arith.constant 0 : index
    %c0_9 = arith.constant 0 : index
    %9 = vector.load %arg4[%c0_8, %c0_9] : memref<16x32xf32, #tpu.memory_space<vmem>>, vector<16x32xf32>
    %c0_10 = arith.constant 0 : index
    %c0_11 = arith.constant 0 : index
    %10 = vector.load %arg3[%c0_10, %c0_11] : memref<16x1xf32, #tpu.memory_space<vmem>>, vector<16x1xf32>
    %11 = vector.broadcast %10 : vector<16x1xf32> to vector<16x32xf32>
    %12 = arith.mulf %9, %11 : vector<16x32xf32>
    %cst_12 = arith.constant dense<0.000000e+00> : vector<32xf32>
    %13 = vector.multi_reduction <add>, %12, %cst_12 [0] : vector<16x32xf32> to vector<32xf32>
    %14 = vector.shape_cast %13 : vector<32xf32> to vector<1x32xf32>
    %c0_13 = arith.constant 0 : index
    %c0_14 = arith.constant 0 : index
    %15 = vector.load %arg7[%c0_13, %c0_14] : memref<32x32xf32, #tpu.memory_space<vmem>>, vector<32x32xf32>
    %cst_15 = arith.constant dense<0.000000e+00> : vector<1x32xf32>
    %16 = tpu.matmul %14, %15, %cst_15 {dimension_numbers = #tpu.dot_dimension_numbers<[1], [0], [0], [1], [0, 0, 1, 1], [], []>} : vector<1x32xf32>, vector<32x32xf32>, vector<1x32xf32> -> vector<1x32xf32>
    %c0_16 = arith.constant 0 : index
    %c0_17 = arith.constant 0 : index
    %17 = vector.load %arg8[%c0_16, %c0_17] : memref<1x32xf32, #tpu.memory_space<vmem>>, vector<1x32xf32>
    %18 = arith.addf %16, %17 : vector<1x32xf32>
    %19 = math.tanh %18 : vector<1x32xf32>
    %20 = vector.broadcast %19 : vector<1x32xf32> to vector<8x32xf32>
    %21 = arith.mulf %8, %20 : vector<8x32xf32>
    %cst_18 = arith.constant dense<0.000000e+00> : vector<8xf32>
    %22 = vector.multi_reduction <add>, %21, %cst_18 [1] : vector<8x32xf32> to vector<8xf32>
    %23 = vector.shape_cast %22 : vector<8xf32> to vector<8x1xf32>
    %24 = arith.negf %23 : vector<8x1xf32>
    %25 = math.exp %24 : vector<8x1xf32>
    %cst_19 = arith.constant 1.000000e+00 : f32
    %26 = vector.broadcast %cst_19 : f32 to vector<8x1xf32>
    %27 = arith.addf %26, %25 : vector<8x1xf32>
    %28 = arith.divf %26, %27 : vector<8x1xf32>
    %c0_20 = arith.constant 0 : index
    %c0_21 = arith.constant 0 : index
    %29 = vector.load %arg9[%c0_20, %c0_21] : memref<8x1xf32, #tpu.memory_space<vmem>>, vector<8x1xf32>
    tpu.vector_store %arg9[%c0_20, %c0_21], %28 {strides = array<i32>} : memref<8x1xf32, #tpu.memory_space<vmem>>, vector<8x1xf32>,
    return
  }
  func.func @transform_0(%arg0: i32) -> (i32, i32) {
    %c0_i32 = arith.constant 0 : i32
    %c0_i32_0 = arith.constant 0 : i32
    return %arg0, %c0_i32 : i32, i32
  }
  func.func @transform_1(%arg0: i32) -> (i32, i32) {
    %c0_i32 = arith.constant 0 : i32
    %c0_i32_0 = arith.constant 0 : i32
    return %arg0, %c0_i32 : i32, i32
  }
  func.func @transform_2(%arg0: i32) -> (i32, i32) {
    %c0_i32 = arith.constant 0 : i32
    %c0_i32_0 = arith.constant 0 : i32
    return %arg0, %c0_i32 : i32, i32
  }
  func.func @transform_3(%arg0: i32) -> (i32, i32) {
    %c0_i32 = arith.constant 0 : i32
    %c0_i32_0 = arith.constant 0 : i32
    return %arg0, %c0_i32 : i32, i32
  }
  func.func @transform_4(%arg0: i32) -> (i32, i32) {
    %c0_i32 = arith.constant 0 : i32
    %c0_i32_0 = arith.constant 0 : i32
    %c0_i32_1 = arith.constant 0 : i32
    return %c0_i32, %c0_i32_0 : i32, i32
  }
  func.func @transform_5(%arg0: i32) -> (i32, i32) {
    %c0_i32 = arith.constant 0 : i32
    %c0_i32_0 = arith.constant 0 : i32
    %c0_i32_1 = arith.constant 0 : i32
    return %c0_i32, %c0_i32_0 : i32, i32
  }
  func.func @transform_6(%arg0: i32) -> (i32, i32) {
    %c0_i32 = arith.constant 0 : i32
    %c0_i32_0 = arith.constant 0 : i32
    %c0_i32_1 = arith.constant 0 : i32
    return %c0_i32, %c0_i32_0 : i32, i32
  }
  func.func @transform_7(%arg0: i32) -> (i32, i32) {
    %c0_i32 = arith.constant 0 : i32
    %c0_i32_0 = arith.constant 0 : i32
    %c0_i32_1 = arith.constant 0 : i32
    return %c0_i32, %c0_i32_0 : i32, i32
  }
  func.func @transform_8(%arg0: i32) -> (i32, i32) {
    %c0_i32 = arith.constant 0 : i32
    %c0_i32_0 = arith.constant 0 : i32
    return %arg0, %c0_i32 : i32, i32
  }
}

</mosaic_0001>

<bundles_post_ra>
// kernel: _batched_scores.1
= control target key start
LH: loop header
LB: loop body
LE: loop exit
PB: predicated region body
PF: predicated region fallthrough
CT: control target
= control target key end

     0   :  { %s966_s27 = smov 0   ;;  %s1083_s0 = inlined_call_operand.vmem [shape: f32[16,128], index: 0, kind: input, shape index: {}]   ;;  %s1084_s1 = inlined_call_operand.vmem [shape: f32[256,32], index: 1, kind: input, shape index: {}]   ;;  %s1085_s2 = inlined_call_operand.vmem [shape: f32[32,1], index: 2, kind: input, shape index: {}]   ;;  %s1086_s3 = inlined_call_operand.vmem [shape: f32[32,32], index: 3, kind: input, shape index: {}]   ;;  %s1087_s4 = inlined_call_operand.vmem [shape: f32[32,32], index: 4, kind: input, shape index: {}]   ;;  %s1088_s5 = inlined_call_operand.vmem [shape: f32[1,32], index: 5, kind: input, shape index: {}]   ;;  %s1089_s6 = inlined_call_operand.vmem [shape: f32[32,32], index: 6, kind: input, shape index: {}]   ;;  %s1090_s7 = inlined_call_operand.vmem [shape: f32[1,32], index: 7, kind: input, shape index: {}]   ;;  %s1091_s8 = inlined_call_operand.vmem [shape: f32[16,1], index: 8, kind: output, shape index: {}]  }
   0x1 LB: > { %s972_s28 = sadd.s32 4294967295, %s915_s27   ;;  %p753_p0 = scmp.ge.s32.totalorder %s915_s27, 1  ;;  %s915_s27 = sphi %s966_s27, %s18_s27  }
   0x2   : > { %p294_p1 = scmp.lt.s32.totalorder %s915_s27, 3 }
   0x4   : > { %p295_p2 = pnand %p753_p0, %p294_p1 }
   0x5   : > { %s755_s29 = sshll.u32 (!%p295_p2), %s972_s28, 4  ;;  %v917_v0 = vmov (!%p295_p2), 0.0|0.0   ;;  %vm918_vm0 = vmmov (!%p295_p2), 0   ;;  %v919_v1 = vmov (!%p295_p2), 0.0   ;;  %s757_s30 = sshll.u32 (!%p295_p2), %s972_s28, 1  ;;  %v920_v2 = vmov (!%p295_p2), 0  }
   0x6   : > { %298 = sbr.rel (%p295_p2) target bundleno = 669 (0x29d), region = 52  ;;  %852 = vmatprep.subr.bf16.mxu0 (!%p295_p2), %v917_v0  ;;  %p346_p3 = scmp.lt.s32.totalorder (!%p295_p2), %s755_s29, 31  ;;  %827 = vmatprep.mubr.msk.f32.mxu0 (!%p295_p2), %vm918_vm0, %v919_v1  ;;  %v454_v28 = vld [vmem:[%s1087_s4] sm:$0xff] (!%p295_p2)  ;;  %v455_v29 = vld [vmem:[%s1087_s4 + $0x8] sm:$0xff] (!%p295_p2)  ;;  %v456_v30 = vld [vmem:[%s1087_s4 + $0x10] sm:$0xff] (!%p295_p2)  ;;  %vm465_vm1 = vcmask (!%p295_p2), 261120  }
   0x7   : > { %900 = vset.pattern.permute.xlu0 (!%p295_p2), %v920_v2  ;;  %876 = vmatprep.subr.bf16.mxu1 (!%p295_p2), %v917_v0  ;;  %p352_p4 = scmp.lt.s32.totalorder (!%p295_p2), %s757_s30, 3  ;;  %p341_p5 = scmp.lt.s32.totalorder (!%p295_p2), %s972_s28, 1  ;;  %v877_v31 = vpack.c.bf16 (!%p295_p2), %v455_v29, %v454_v28  ;;  %v457_v32 = vld [vmem:[%s1087_s4 + $0x18] sm:$0xff] (!%p295_p2)  ;;  %v565_v48 = vld [vmem:[%s1089_s6] sm:$0xff] (!%p295_p2)  ;;  %v566_v49 = vld [vmem:[%s1089_s6 + $0x8] sm:$0xff] (!%p295_p2)  ;;  %vm658_vm2 = vcmask (!%p295_p2), 7168  }
   0x8   : > { %838 = vmatprep.mubr.msk.f32.mxu1 (!%p295_p2), %vm918_vm0, %v919_v1  ;;  %v880_v34 = vpack.c.bf16 (!%p295_p2), %v457_v32, %v456_v30  ;;  %v883_v50 = vpack.c.bf16 (!%p295_p2), %v566_v49, %v565_v48  ;;  %v567_v52 = vld [vmem:[%s1089_s6 + $0x10] sm:$0xff] (!%p295_p2)  ;;  %v568_v53 = vld [vmem:[%s1089_s6 + $0x18] sm:$0xff] (!%p295_p2)  ;;  %v762_v61 = vld [vmem:[%s1088_s5] ss:$0 sm:$0xff] (!%p295_p2) }
   0x9   : > { %878 = vmatpush3.bf16.msra.mxu1 (!%p295_p2), %v877_v31  ;;  %v886_v56 = vpack.c.bf16 (!%p295_p2), %v568_v53, %v567_v52  ;;  %v569_v62 = vld [vmem:[%s1090_s7] sm:$0x1] (!%p295_p2) }
   0xa   : > { %879 = vmatprep.subr.bf16.mxu1 (!%p295_p2), %v917_v0 }
   0xd   : > { %s1093_s29 = smov (!%p346_p3, %s755_s29), 31  ;;  %s1095_s30 = smov (!%p352_p4, %s757_s30), 3  ;;  %881 = vmatpush3.bf16.msra.mxu1 %v880_v34 }
   0xe   : > { %s756_s9 = sshll.u32 %s1093_s29, 3  ;;  %s758_s13 = sshll.u32 %s1095_s30, 3  ;;  %882 = vmatprep.subr.bf16.mxu1 %v917_v0 }
   0xf   : > { %s987_s12 = scalar_lea.vmem %s1084_s1, %s756_s9  ;;  %s355_s16 = scalar_lea.vmem %s1085_s2, %s758_s13 }
  0x10   : > { %v368_v3 = vld [vmem:[%s987_s12] sm:$0xff]  ;;  %v369_v4 = vld [vmem:[%s987_s12 + $0x8] sm:$0xff]  ;;  %v370_v5 = vld [vmem:[%s987_s12 + $0x10] sm:$0xff]  ;;  %s1097_s28 = smov (!%p341_p5, %s972_s28), 1 }
  0x11   : > { %v853_v6 = vpack.c.bf16 %v369_v4, %v368_v3  ;;  %v371_v7 = vld [vmem:[%s987_s12 + $0x18] sm:$0xff]  ;;  %v372_v9 = vld [vmem:[%s987_s12 + $0x20] sm:$0xff]  ;;  %v373_v10 = vld [vmem:[%s987_s12 + $0x28] sm:$0xff]  ;;  %s754_s17 = sshll.u32 %s1097_s28, 3  ;;  %v644_v4 = vlaneseq }
  0x12   : > { %v856_v8 = vpack.c.bf16 %v371_v7, %v370_v5  ;;  %v542_v11 = vld [vmem:[%s355_s16] sm:$0xff]  ;;  %v859_v12 = vpack.c.bf16 %v373_v10, %v372_v9  ;;  %v543_v13 = vld [vmem:[%s355_s16 + $0x8] sm:$0xff]  ;;  %v374_v14 = vld [vmem:[%s987_s12 + $0x30] sm:$0xff]  ;;  %s344_s9 = scalar_lea.vmem %s1083_s0, %s754_s17  ;;  %s366_s29 = scalar_lea.vmem %s1091_s8, %s754_s17 }
  0x13   : > { %854 = vmatpush3.bf16.msra.mxu0 %v853_v6  ;;  %546 = vperm.xlu0 %900, %v542_v11   ;;  %v375_v15 = vld [vmem:[%s987_s12 + $0x38] sm:$0xff]  ;;  %v376_v17 = vld [vmem:[%s987_s12 + $0x40] sm:$0xff]  ;;  %v377_v18 = vld [vmem:[%s987_s12 + $0x48] sm:$0xff] }
  0x14   : > { %855 = vmatprep.subr.bf16.mxu0 %v917_v0  ;;  %v862_v16 = vpack.c.bf16 %v375_v15, %v374_v14  ;;  %v865_v19 = vpack.c.bf16 %v377_v18, %v376_v17  ;;  %v378_v20 = vld [vmem:[%s987_s12 + $0x50] sm:$0xff]  ;;  %v379_v21 = vld [vmem:[%s987_s12 + $0x58] sm:$0xff]  ;;  %v380_v23 = vld [vmem:[%s987_s12 + $0x60] sm:$0xff] }
  0x15   : > { %v868_v22 = vpack.c.bf16 %v379_v21, %v378_v20  ;;  %v381_v24 = vld [vmem:[%s987_s12 + $0x68] sm:$0xff]  ;;  %v382_v26 = vld [vmem:[%s987_s12 + $0x70] sm:$0xff]  ;;  %v383_v27 = vld [vmem:[%s987_s12 + $0x78] sm:$0xff]  ;;  %s361_s12 = scalar_lea.vmem %s1086_s3, %s758_s13 }
  0x16   : > { %v871_v25 = vpack.c.bf16 %v381_v24, %v380_v23  ;;  %v874_v33 = vpack.c.bf16 %v383_v27, %v382_v26  ;;  %v367_v35 = vld [vmem:[%s344_s9] sm:$0xff]  ;;  %v541_v38 = vld [vmem:[%s361_s12 + $0x8] sm:$0xff] }
  0x17   : > { %857 = vmatpush3.bf16.msra.mxu0 %v856_v8  ;;  %551 = vperm.xlu0 %900, %v543_v13   ;;  %v540_v37 = vld [vmem:[%s361_s12] sm:$0xff] }
  0x18   : > { %858 = vmatprep.subr.bf16.mxu0 %v917_v0 }
  0x1b   : > { %860 = vmatpush3.bf16.msra.mxu0 %v859_v12 }
  0x1c   : > { %861 = vmatprep.subr.bf16.mxu0 %v917_v0 }
  0x1f   : > { %863 = vmatpush3.bf16.msra.mxu0 %v862_v16 }
  0x20   : > { %864 = vmatprep.subr.bf16.mxu0 %v917_v0 }
  0x23   : > { %866 = vmatpush3.bf16.msra.mxu0 %v865_v19 }
  0x24   : > { %867 = vmatprep.subr.bf16.mxu0 %v917_v0 }
  0x27   : > { %869 = vmatpush3.bf16.msra.mxu0 %v868_v22 }
  0x28   : > { %870 = vmatprep.subr.bf16.mxu0 %v917_v0 }
  0x2b   : > { %872 = vmatpush3.bf16.msra.mxu0 %v871_v25 }
  0x2c   : > { %873 = vmatprep.subr.bf16.mxu0 %v917_v0 }
  0x2f   : > { %875 = vmatpush3.bf16.msra.mxu0 %v874_v33 }
  0x32   : > { %828 = vmatmul.mubr.f32.vlgmr.msra.gmra.mrb[0].mxu0 %v367_v35 }
  0x92   : > { %v547_v36 = vpop.permute.xlu0 %546 }
  0x93   : > { %v554_v40 = vmul.f32 %v547_v36, %v540_v37 }
  0x95   : > { %v556_v42 = vsel %vm465_vm1, %v554_v40, 0.0 }
  0x96   : > { %v552_v39 = vpop.permute.xlu0 %551 }
  0x97   : > { %v555_v41 = vmul.f32 %v552_v39, %v541_v38 }
  0x99   : > { %v557_v43 = vsel %vm465_vm1, %v555_v41, 0.0 }
  0x9a   : > { %v558_v44 = vadd.f32 %v557_v43, %v556_v42 }
  0x9c   : > { %v559_v45 = vrot.slane %v558_v44, 4 }
  0x9e   : > { %v560_v46 = vadd.f32 %v559_v45, %v558_v44 }
  0xa0   : > { %v561_v47 = vrot.slane %v560_v46, 2 }
  0xa2   : > { %v562_v51 = vadd.f32 %v561_v47, %v560_v46 }
  0xa4   : > { %v563_v57 = vrot.slane %v562_v51, 1 }
  0xa6   : > { %v564_v58 = vadd.f32 %v563_v57, %v562_v51 }
 0x105   : > { %v450_v54 = vpop.f32.mrb[0].mxu0 }
 0x106   : > { %v829_v55 = vpop.f32.mrb[1].mxu0  ;;  %839 = vmatmul.mubr.msk.f32.vlgmr.msra.gmra.mrb[0].mxu1 %vm465_vm1, %v450_v54 }
 0x107   : > { %884 = vmatpush3.bf16.msra.mxu1 %v883_v50  ;;  %849 = vmatprep.mubr.msk.f32.mxu1 %vm918_vm0, %v919_v1 }
 0x108   : > { %885 = vmatprep.subr.bf16.mxu1 %v917_v0  ;;  %v645_v0 = vshrl.u32 %v644_v4, 7 }
 0x10a   : > { %v646_v5 = vsub.s32 0, %v645_v0 }
 0x10b   : > { %887 = vmatpush3.bf16.msra.mxu1 %v886_v56 }
 0x10e   : > { %850 = vmatmul.mubr.msk.f32.vlgmr.msra.gmra.mrb[2].mxu1 %vm465_vm1, %v564_v58 }
 0x1d9   : > { %v535_v59 = vpop.f32.mrb[0].mxu1 }
 0x1da   : > { %v840_v60 = vpop.f32.mrb[1].mxu1  ;;  %v536_v2 = vadd.f32 %v762_v61, %v535_v59 }
 0x1e1   : > { %v639_v63 = vpop.f32.mrb[2].mxu1 }
 0x1e2   : > { %v640_v1 = vadd.f32 %v639_v63, %v569_v62  ;;  %v851_v3 = vpop.f32.mrb[3].mxu1 }
 0x1e4   : > { %901 = vtanh.f32 %v640_v1 }
 0x1e5   : > { %903 = vtanh.f32 %v536_v2 }
 0x1ee   : > { %v902_v6 = vpop.eup %901 }
 0x1ef   : > { %v647_v7 = vrot.slane %v902_v6, %v646_v5  ;;  %v904_v8 = vpop.eup %903 }
 0x1f1   : > { %v648_v9 = vmul.f32 %v904_v8, %v647_v7 }
 0x1f3   : > { %v649_v10 = vsel %vm465_vm1, %v648_v9, 0.0 }
 0x1f4   : > { %650 = vadd.xlane.f32.xlu1 %v649_v10 }
 0x281   : > { %v651_v11 = vpop.xlane.xlu1 %650 }
 0x282   : > { %v765_v12 = vmul.f32 -1.442695, %v651_v11 }
 0x284   : > { %905 = vpow2.f32 %v765_v12 }
 0x28e   : > { %v906_v13 = vpop.eup %905 }
 0x28f   : > { %v655_v14 = vadd.f32 1.0, %v906_v13 }
 0x291   : > { %907 = vrcp.f32 %v655_v14 }
 0x29b   : > { %v908_v15 = vpop.eup %907 }
 0x29c   : > { %659 = vst.msk [vmem:[%s366_s29] sm:$0xff] %vm658_vm2, %v908_v15 }
 0x29d PF: > { %s18_s27 = sadd.s32 1, %s915_s27  }
 0x29e   : > { %p15_p6 = scmp.ge.s32.totalorder %s18_s27, 4  }
 0x2a0   :  { %17 = sbr.rel (!%p15_p6) target bundleno = 1 (0x1), region = 91 }

</bundles_post_ra>
